<compile_context>
chip_gen: v7x
topology: tpu7x:2x2x1
jax: 0.10.0
libtpu: 0.0.40
codegen_flags: <defaults>
</compile_context>

<pallas_src>
import functools

import jax
import jax.numpy as jnp
from jax.experimental import pallas as pl
from jax.experimental.pallas import tpu as pltpu


def _round_up(x, m):
    return (x + m - 1) // m * m


def _chain_kernel(x_ref, scale_ref, bias_ref, y_ref, *, num_layers):
    """Apply the whole affine chain to one (row_tile, hw_tile) block."""
    v = x_ref[...].astype(jnp.float32)            # (row_tile, hw_tile)
    for l in range(num_layers):                   # static unroll over layers
        # (row_tile, 1) column broadcasts over the lane axis -> one VPU FMA/layer
        v = v * scale_ref[l] + bias_ref[l]
    y_ref[...] = v.astype(y_ref.dtype)


def sequential_flow_forward(x, logpx, log_scales, biases):
    """SequentialFlow.forward for a chain of per-channel affine flows.

    x:          (N, C, H, W)
    logpx:      (N,) or None
    log_scales: (L, C)   per-layer log scales
    biases:     (L, C)   per-layer biases
    """
    n, c, h, w = x.shape
    num_layers = log_scales.shape[0]
    hw = h * w
    rows = n * c

    # ---- tiling: dense 2-D (rows, HW) view, ~<=2 MiB f32 blocks --------------
    hw_tile = min(_round_up(hw, 128), 2048)
    hw_pad = _round_up(hw, hw_tile)
    row_tile = max(8, min(_round_up(rows, 8),
                          max(8, (2 * 1024 * 1024) // (hw_tile * 4))))
    row_tile = _round_up(row_tile, 8)
    rows_pad = _round_up(rows, row_tile)

    x2d = x.reshape(rows, hw)
    x2d = jnp.pad(x2d, ((0, rows_pad - rows), (0, hw_pad - hw)))

    # per-row parameters: row = n_idx*C + c  ->  channel = row % C.
    # Pre-tiled once in the wrapper (a few KB) so the kernel sees dense columns.
    scales = jnp.exp(log_scales).astype(jnp.float32)                       # (L, C)
    scale_rows = jnp.tile(scales, (1, n)).reshape(num_layers, rows, 1)
    bias_rows = jnp.tile(biases.astype(jnp.float32), (1, n)).reshape(num_layers, rows, 1)
    scale_rows = jnp.pad(scale_rows, ((0, 0), (0, rows_pad - rows), (0, 0)))
    bias_rows = jnp.pad(bias_rows, ((0, 0), (0, rows_pad - rows), (0, 0)))

    grid = (rows_pad // row_tile, hw_pad // hw_tile)
    itemsize = jnp.dtype(x.dtype).itemsize

    y2d = pl.pallas_call(
        functools.partial(_chain_kernel, num_layers=num_layers),
        grid_spec=pltpu.PrefetchScalarGridSpec(
            num_scalar_prefetch=0,
            grid=grid,
            in_specs=[
                pl.BlockSpec((row_tile, hw_tile), lambda i, j: (i, j)),          # x
                pl.BlockSpec((num_layers, row_tile, 1), lambda i, j: (0, i, 0)),  # scales
                pl.BlockSpec((num_layers, row_tile, 1), lambda i, j: (0, i, 0)),  # biases
            ],
            out_specs=pl.BlockSpec((row_tile, hw_tile), lambda i, j: (i, j)),     # y
        ),
        out_shape=jax.ShapeDtypeStruct((rows_pad, hw_pad), x.dtype),
        compiler_params=pltpu.CompilerParams(
            dimension_semantics=("parallel", "parallel"),
            vmem_limit_bytes=32 * 1024 * 1024,
        ),
        cost_estimate=pl.CostEstimate(
            flops=2 * num_layers * rows_pad * hw_pad,
            transcendentals=0,
            bytes_accessed=2 * rows_pad * hw_pad * itemsize,
        ),
    )(x2d, scale_rows, bias_rows)

    y = y2d[:rows, :hw].reshape(n, c, h, w)

    if logpx is None:
        return y

    # Trivial (N,) log-density update: done in the wrapper, XLA fuses it for free.
    logpy = logpx.astype(jnp.float32) + jnp.float32(hw) * jnp.sum(log_scales)
    return y, logpy


if __name__ == "__main__":
    key = jax.random.PRNGKey(0)
    k1, k2, k3, k4 = jax.random.split(key, 4)

    N, C, H, W, L = 2, 4, 16, 16, 3
    x = jax.random.normal(k1, (N, C, H, W), dtype=jnp.float32)
    logpx = jax.random.normal(k2, (N,), dtype=jnp.float32)

    # deterministic chain parameters (L ActNorm-like per-channel affine flows)
    log_scales = 0.1 * jax.random.normal(k3, (L, C), dtype=jnp.float32)
    biases = 0.1 * jax.random.normal(k4, (L, C), dtype=jnp.float32)

    out_x, out_logpx = sequential_flow_forward(x, logpx, log_scales, biases)
    out_x = jax.block_until_ready(out_x)
    out_logpx = jax.block_until_ready(out_logpx)

    # pure-JAX reference: apply the chain layer by layer (SequentialFlow.forward)
    ref_x = x
    ref_logpx = logpx
    for l in range(L):
        ref_x = ref_x * jnp.exp(log_scales[l]).reshape(1, C, 1, 1) \
                + biases[l].reshape(1, C, 1, 1)
        ref_logpx = ref_logpx + (H * W) * jnp.sum(log_scales[l])

    assert out_x.shape == (N, C, H, W)
    assert jnp.allclose(out_x, ref_x, atol=1e-5, rtol=1e-5)
    assert jnp.allclose(out_logpx, ref_logpx, atol=1e-5, rtol=1e-5)

    print("KERNEL_OK")
</pallas_src>

<mosaic_0001>
module attributes {stable_mosaic.version = 11 : i64} {
  func.func @_chain_kernel(%arg0: i32, %arg1: i32, %arg2: memref<8x256xf32, #tpu.memory_space<vmem>>, %arg3: memref<3x8x1xf32, #tpu.memory_space<vmem>>, %arg4: memref<3x8x1xf32, #tpu.memory_space<vmem>>, %arg5: memref<8x256xf32, #tpu.memory_space<vmem>>) attributes {dimension_semantics = [#tpu.dimension_semantics<parallel>, #tpu.dimension_semantics<parallel>], iteration_bounds = array<i64: 1, 1>, scalar_prefetch = 0 : i64, scratch_operands = 0 : i64, tpu.core_type = #tpu.core_type<tc>, window_params = [{transform_indices = @transform_0, window_bounds = array<i64: 8, 256>}, {transform_indices = @transform_1, window_bounds = array<i64: 3, 8, 1>}, {transform_indices = @transform_2, window_bounds = array<i64: 3, 8, 1>}, {transform_indices = @transform_3, window_bounds = array<i64: 8, 256>}]} {
    %c0 = arith.constant 0 : index
    %c0_0 = arith.constant 0 : index
    %0 = vector.load %arg2[%c0, %c0_0] : memref<8x256xf32, #tpu.memory_space<vmem>>, vector<8x256xf32>
    %c0_1 = arith.constant 0 : index
    %c0_2 = arith.constant 0 : index
    %c0_3 = arith.constant 0 : index
    %1 = vector.load %arg3[%c0_1, %c0_2, %c0_3] : memref<3x8x1xf32, #tpu.memory_space<vmem>>, vector<1x8x1xf32>
    %2 = vector.shape_cast %1 : vector<1x8x1xf32> to vector<8x1xf32>
    %3 = vector.broadcast %2 : vector<8x1xf32> to vector<8x256xf32>
    %4 = arith.mulf %0, %3 : vector<8x256xf32>
    %c0_4 = arith.constant 0 : index
    %c0_5 = arith.constant 0 : index
    %c0_6 = arith.constant 0 : index
    %5 = vector.load %arg4[%c0_4, %c0_5, %c0_6] : memref<3x8x1xf32, #tpu.memory_space<vmem>>, vector<1x8x1xf32>
    %6 = vector.shape_cast %5 : vector<1x8x1xf32> to vector<8x1xf32>
    %7 = vector.broadcast %6 : vector<8x1xf32> to vector<8x256xf32>
    %8 = arith.addf %4, %7 : vector<8x256xf32>
    %c1 = arith.constant 1 : index
    %c0_7 = arith.constant 0 : index
    %c0_8 = arith.constant 0 : index
    %9 = vector.load %arg3[%c1, %c0_7, %c0_8] : memref<3x8x1xf32, #tpu.memory_space<vmem>>, vector<1x8x1xf32>
    %10 = vector.shape_cast %9 : vector<1x8x1xf32> to vector<8x1xf32>
    %11 = vector.broadcast %10 : vector<8x1xf32> to vector<8x256xf32>
    %12 = arith.mulf %8, %11 : vector<8x256xf32>
    %c1_9 = arith.constant 1 : index
    %c0_10 = arith.constant 0 : index
    %c0_11 = arith.constant 0 : index
    %13 = vector.load %arg4[%c1_9, %c0_10, %c0_11] : memref<3x8x1xf32, #tpu.memory_space<vmem>>, vector<1x8x1xf32>
    %14 = vector.shape_cast %13 : vector<1x8x1xf32> to vector<8x1xf32>
    %15 = vector.broadcast %14 : vector<8x1xf32> to vector<8x256xf32>
    %16 = arith.addf %12, %15 : vector<8x256xf32>
    %c2 = arith.constant 2 : index
    %c0_12 = arith.constant 0 : index
    %c0_13 = arith.constant 0 : index
    %17 = vector.load %arg3[%c2, %c0_12, %c0_13] : memref<3x8x1xf32, #tpu.memory_space<vmem>>, vector<1x8x1xf32>
    %18 = vector.shape_cast %17 : vector<1x8x1xf32> to vector<8x1xf32>
    %19 = vector.broadcast %18 : vector<8x1xf32> to vector<8x256xf32>
    %20 = arith.mulf %16, %19 : vector<8x256xf32>
    %c2_14 = arith.constant 2 : index
    %c0_15 = arith.constant 0 : index
    %c0_16 = arith.constant 0 : index
    %21 = vector.load %arg4[%c2_14, %c0_15, %c0_16] : memref<3x8x1xf32, #tpu.memory_space<vmem>>, vector<1x8x1xf32>
    %22 = vector.shape_cast %21 : vector<1x8x1xf32> to vector<8x1xf32>
    %23 = vector.broadcast %22 : vector<8x1xf32> to vector<8x256xf32>
    %24 = arith.addf %20, %23 : vector<8x256xf32>
    %c0_17 = arith.constant 0 : index
    %c0_18 = arith.constant 0 : index
    %25 = vector.load %arg5[%c0_17, %c0_18] : memref<8x256xf32, #tpu.memory_space<vmem>>, vector<8x256xf32>
    tpu.vector_store %arg5[%c0_17, %c0_18], %24 {strides = array<i32>} : memref<8x256xf32, #tpu.memory_space<vmem>>, vector<8x256xf32>,
    return
  }
  func.func @transform_0(%arg0: i32, %arg1: i32) -> (i32, i32) {
    %c0_i32 = arith.constant 0 : i32
    return %arg0, %arg1 : i32, i32
  }
  func.func @transform_1(%arg0: i32, %arg1: i32) -> (i32, i32, i32) {
    %c0_i32 = arith.constant 0 : i32
    %c0_i32_0 = arith.constant 0 : i32
    %c0_i32_1 = arith.constant 0 : i32
    return %c0_i32, %arg0, %c0_i32_0 : i32, i32, i32
  }
  func.func @transform_2(%arg0: i32, %arg1: i32) -> (i32, i32, i32) {
    %c0_i32 = arith.constant 0 : i32
    %c0_i32_0 = arith.constant 0 : i32
    %c0_i32_1 = arith.constant 0 : i32
    return %c0_i32, %arg0, %c0_i32_0 : i32, i32, i32
  }
  func.func @transform_3(%arg0: i32, %arg1: i32) -> (i32, i32) {
    %c0_i32 = arith.constant 0 : i32
    return %arg0, %arg1 : i32, i32
  }
}

</mosaic_0001>

<bundles_post_ra>
// kernel: tpu_custom_call.1
= control target key start
LH: loop header
LB: loop body
LE: loop exit
PB: predicated region body
PF: predicated region fallthrough
CT: control target
= control target key end

     0   :  { %v117_v2 = vmov 0   ;;  %s175_s0 = inlined_call_operand.vmem [shape: f32[8,256], index: 0, kind: input, shape index: {}]   ;;  %s176_s1 = inlined_call_operand.vmem [shape: f32[3,8,1], index: 1, kind: input, shape index: {}]   ;;  %s177_s2 = inlined_call_operand.vmem [shape: f32[3,8,1], index: 2, kind: input, shape index: {}]   ;;  %s178_s3 = inlined_call_operand.hbm [shape: f32[8,256], index: 3, kind: output, shape index: {}]  }
   0x1   :  { %v85_v0 = vld [vmem:[%s176_s1 + $0x8] sm:$0xff]  ;;  %v17_v1 = vld [vmem:[%s176_s1] sm:$0xff]  ;;  %92 = vset.pattern.permute.xlu1 %v117_v2  ;;  %91 = vset.pattern.permute.xlu0 %v117_v2 }
   0x2   :  { %37 = vperm.xlu1 %92, %v85_v0   ;;  %20 = vperm.xlu0 %91, %v17_v1  }
   0x3   :  { %8 = vsyncpa [#allocation3], 0  ;;  %v86_v3 = vld [vmem:[%s177_s2 + $0x8] sm:$0xff]  ;;  %v25_v4 = vld [vmem:[%s177_s2] sm:$0xff] }
   0x4   :  { %v88_v5 = vld [vmem:[%s177_s2 + $0x10] sm:$0xff]  ;;  %v15_v9 = vld [vmem:[%s175_s0] sm:$0xff]  ;;  %v16_v10 = vld [vmem:[%s175_s0 + $0x8] sm:$0xff] }
   0x5   :  { %v87_v6 = vld [vmem:[%s176_s1 + $0x10] sm:$0xff]  ;;  %s118_s1 = smov [#allocation2]  }
   0x6   :  { %46 = vperm.xlu1 %92, %v86_v3   ;;  %28 = vperm.xlu0 %91, %v25_v4   ;;  %s77_s2 = sshll.u32 %s118_s1, 4  ;;  %s78_s2 = int_to_ptr.vmem [resolvable:$true] %s77_s2 }
   0x7   :  { %s93_s0 = scalar_lea.vmem %s78_s2, 256  ;;  %p98_p1 = scmp.lt.s32.totalorder %s78_s2, %s78_s2 }
   0x8   :  { %p94_p0 = scmp.ne.s32.totalorder %s78_s2, %s93_s0  ;;  %p99_p2 = scmp.lt.s32.totalorder %s93_s0, %s93_s0 }
   0xa   :  { %64 = vperm.xlu1 %92, %v88_v5   ;;  %55 = vperm.xlu0 %91, %v87_v6   ;;  %p100_p3 = por %p99_p2, %p98_p1 }
   0xc   :  { %p101_p4 = pnand %p100_p3, %p94_p0 }
  0x81   :  { %v38_v7 = vpop.permute.xlu1 %37  ;;  %v21_v8 = vpop.permute.xlu0 %20 }
  0x82   :  { %v23_v11 = vmul.f32 %v21_v8, %v15_v9  ;;  %v24_v12 = vmul.f32 %v21_v8, %v16_v10 }
  0x85   :  { %v29_v13 = vpop.permute.xlu0 %28  ;;  %v47_v16 = vpop.permute.xlu1 %46 }
  0x86   :  { %v31_v14 = vadd.f32 %v29_v13, %v23_v11  ;;  %v32_v15 = vadd.f32 %v29_v13, %v24_v12 }
  0x88   :  { %v40_v17 = vmul.f32 %v38_v7, %v31_v14  ;;  %v41_v18 = vmul.f32 %v38_v7, %v32_v15 }
  0x89   :  { %v56_v21 = vpop.permute.xlu0 %55  ;;  %v65_v24 = vpop.permute.xlu1 %64 }
  0x8a   :  { %v49_v19 = vadd.f32 %v47_v16, %v40_v17  ;;  %v50_v20 = vadd.f32 %v47_v16, %v41_v18 }
  0x8c   :  { %v58_v22 = vmul.f32 %v56_v21, %v49_v19  ;;  %v59_v23 = vmul.f32 %v56_v21, %v50_v20 }
  0x8e   :  { %v67_v25 = vadd.f32 %v65_v24, %v58_v22  ;;  %v68_v26 = vadd.f32 %v65_v24, %v59_v23 }
  0x90   :  { %69 = vst [vmem:[#allocation2] sm:$0xff] %v67_v25  ;;  %70 = vst [vmem:[#allocation2 + $0x8] sm:$0xff] %v68_v26 }
  0x91   :  { %104 = shalt.err (!%p101_p4)
}
  0x92   :  { %s105_s30 = scalar_lea.hbm %s178_s3, 256 }
  0x93   :  { %p106_p5 = scmp.ne.s32.totalorder %s178_s3, %s105_s30  ;;  %p109_p6 = scmp.lt.u32.totalorder %s105_s30, %s178_s3 }
  0x95   :  { %p111_p7 = pnand %p109_p6, %p106_p5 }
  0x97   :  { %114 = shalt.err (!%p111_p7)
}
  0x98   :  { %80 = dma.vmem_to_hbm [thread:$0]  %s78_s2, 256, %s178_s3, [#allocation3]  }
  0x99   :  { %115 = dma.done.wait [#allocation3], 256  }
  0x9a   :  { %116 = vsyncadd [#allocation3], 4294967040 }
  0x9b   :  { %84 = vsyncpa [#allocation3], 1 }

</bundles_post_ra>
